<compile_context>
chip_gen: v5e
topology: v5e:2x2
jax: 0.10.0
libtpu: 0.0.40
codegen_flags: <defaults>
</compile_context>

<pallas_src>
import jax
import jax.numpy as jnp
from jax.experimental import pallas as pl
from jax.experimental.pallas import tpu as pltpu

NEG_SLOPE = 0.01  # nn.LeakyReLU default negative_slope


def _leaky_relu(v):
    return jnp.where(v > 0, v, NEG_SLOPE * v)


def senet_kernel(x_ref, a_ref, b_ref, o_ref):
    x = x_ref[...]                                                    # (TB, F*D)

    # Squeeze + first Linear fused: per-field mean folded into A's rows.
    h = jnp.dot(x, a_ref[...], preferred_element_type=jnp.float32)    # (TB, W)
    h = _leaky_relu(h)

    # Second Linear + per-field broadcast fused: Bmat columns replicated D x.
    g = jnp.dot(h.astype(b_ref.dtype), b_ref[...],
                preferred_element_type=jnp.float32)                   # (TB, F*D)
    g = _leaky_relu(g)

    # Re-weight: single lane-dense multiply + unmasked contiguous store.
    o_ref[...] = x * g.astype(x.dtype)


def _choose_batch_tile(batch, row_bytes, itemsize, target_tile_bytes):
    sub = max(8, 32 // itemsize)            # sublane multiple: 8 f32, 16 bf16
    tb = max(sub, (target_tile_bytes // max(row_bytes, 1)) // sub * sub)
    if batch <= tb:
        return batch                        # one block; block dim == array dim is legal
    return tb


def senet_forward(x, w1, w2, *, target_tile_bytes=4 * 1024 * 1024):
    """x: (B, F, D); w1: (W, F); w2: (F, W) -- nn.Linear layout, bias-free."""
    B, F, D = x.shape
    W, F_in = w1.shape
    assert F_in == F and w2.shape == (F, W)
    FD = F * D

    x2 = x.reshape(B, FD)                   # lane-dense 2-D layout (free reshape)

    # Fused weights, built once per call (negligible next to streaming x).
    w_dtype = jnp.bfloat16 if x.dtype == jnp.bfloat16 else jnp.float32
    a_mat = jnp.repeat(w1.T.astype(jnp.float32) * (1.0 / D), D, axis=0)  # (F*D, W)
    b_mat = jnp.repeat(w2.T.astype(jnp.float32), D, axis=1)              # (W, F*D)
    a_mat = a_mat.astype(w_dtype)
    b_mat = b_mat.astype(w_dtype)

    itemsize = jnp.dtype(x.dtype).itemsize
    TB = _choose_batch_tile(B, FD * itemsize, itemsize, target_tile_bytes)
    grid = pl.cdiv(B, TB)                   # ragged tail handled by Pallas (no pad copy)

    out2 = pl.pallas_call(
        senet_kernel,
        out_shape=jax.ShapeDtypeStruct((B, FD), x.dtype),
        grid_spec=pltpu.PrefetchScalarGridSpec(
            num_scalar_prefetch=0,
            grid=(grid,),
            in_specs=[
                pl.BlockSpec((TB, FD), lambda b: (b, 0)),   # streamed x tile
                pl.BlockSpec((FD, W), lambda b: (0, 0)),    # fused w1 (resident)
                pl.BlockSpec((W, FD), lambda b: (0, 0)),    # fused w2 (resident)
            ],
            out_specs=pl.BlockSpec((TB, FD), lambda b: (b, 0)),
        ),
        compiler_params=pltpu.CompilerParams(
            # Batch tiles are fully independent; on multi-TC parts the grid can
            # be sharded across cores.
            dimension_semantics=("parallel",),
            vmem_limit_bytes=48 * 1024 * 1024,   # fits v7x 64 MiB/TC; ample on v5e/v6e
        ),
    )(x2, a_mat, b_mat)

    return out2.reshape(B, F, D)


def senet_reference(x, w1, w2):
    """Module semantics; excitation contractions done with explicit
    broadcast+sum so the reference is exact f32 (independent of the XLA
    matmul-precision default on TPU)."""
    s = jnp.mean(x.astype(jnp.float32), axis=-1)                           # (B, F)
    h = _leaky_relu(jnp.sum(s[:, None, :] * w1[None, :, :], axis=-1))      # (B, W)
    g = _leaky_relu(jnp.sum(h[:, None, :] * w2[None, :, :], axis=-1))      # (B, F)
    return x * g[..., None].astype(x.dtype)


if __name__ == "__main__":
    # Module config: num_fields=4, reduction_ratio=3 -> width = max(1, 4//3) = 1
    B, num_fields, embed_dim = 2, 4, 16
    reduction_ratio = 3
    width = max(1, num_fields // reduction_ratio)

    key = jax.random.PRNGKey(0)
    kx, k1, k2, kx2 = jax.random.split(key, 4)

    # Test data quantized to bf16-exact f32 values so MXU bf16 passes are
    # lossless on the inputs; remaining kernel/reference differences are tiny.
    def q(a):
        return a.astype(jnp.bfloat16).astype(jnp.float32)

    x = q(jax.random.normal(kx, (B, num_fields, embed_dim), dtype=jnp.float32))
    bound1 = 1.0 / jnp.sqrt(num_fields)
    bound2 = 1.0 / jnp.sqrt(width)
    w1 = q(jax.random.uniform(k1, (width, num_fields), jnp.float32, -bound1, bound1))
    w2 = q(jax.random.uniform(k2, (num_fields, width), jnp.float32, -bound2, bound2))

    # Small case: single block (block first dim == array dim).
    out = jax.block_until_ready(senet_forward(x, w1, w2))
    ref = senet_reference(x, w1, w2)
    assert out.shape == x.shape
    # Tolerance leaves headroom for MXU bf16-pass handling of the tiny f32
    # excitation matmuls; typical agreement is far tighter.
    assert jnp.allclose(out, ref, atol=5e-3, rtol=5e-3), "mismatch vs reference (small)"

    # Larger case exercising the multi-tile grid with a ragged tail block
    # (no padding copy): TB=32 -> grid=cdiv(100,32)=4, last block partial.
    B2 = 100
    x_big = q(jax.random.normal(kx2, (B2, num_fields, embed_dim), dtype=jnp.float32))
    out_big = jax.block_until_ready(
        senet_forward(x_big, w1, w2, target_tile_bytes=8192))
    ref_big = senet_reference(x_big, w1, w2)
    assert out_big.shape == x_big.shape
    assert jnp.allclose(out_big, ref_big, atol=5e-3, rtol=5e-3), "mismatch vs reference (tiled)"

    print("KERNEL_OK")
</pallas_src>

<mosaic_0001>
module attributes {stable_mosaic.version = 11 : i64} {
  func.func @senet_kernel(%arg0: i32, %arg1: memref<2x64xf32, #tpu.memory_space<vmem>>, %arg2: memref<64x1xf32, #tpu.memory_space<vmem>>, %arg3: memref<1x64xf32, #tpu.memory_space<vmem>>, %arg4: memref<2x64xf32, #tpu.memory_space<vmem>>) attributes {dimension_semantics = [#tpu.dimension_semantics<parallel>], iteration_bounds = array<i64: 1>, scalar_prefetch = 0 : i64, scratch_operands = 0 : i64, tpu.core_type = #tpu.core_type<tc>, window_params = [{transform_indices = @transform_0, window_bounds = array<i64: 2, 64>}, {pipeline_mode = #tpu.pipeline_mode<synchronous>, transform_indices = @transform_1, window_bounds = array<i64: 64, 1>}, {pipeline_mode = #tpu.pipeline_mode<synchronous>, transform_indices = @transform_2, window_bounds = array<i64: 1, 64>}, {transform_indices = @transform_3, window_bounds = array<i64: 2, 64>}]} {
    %c0 = arith.constant 0 : index
    %c0_0 = arith.constant 0 : index
    %0 = vector.load %arg1[%c0, %c0_0] : memref<2x64xf32, #tpu.memory_space<vmem>>, vector<2x64xf32>
    %c0_1 = arith.constant 0 : index
    %c0_2 = arith.constant 0 : index
    %1 = vector.load %arg2[%c0_1, %c0_2] : memref<64x1xf32, #tpu.memory_space<vmem>>, vector<64x1xf32>
    %cst = arith.constant dense<0.000000e+00> : vector<2x1xf32>
    %2 = tpu.matmul %0, %1, %cst {dimension_numbers = #tpu.dot_dimension_numbers<[1], [0], [0], [1], [0, 0, 1, 1], [], []>} : vector<2x64xf32>, vector<64x1xf32>, vector<2x1xf32> -> vector<2x1xf32>
    %cst_3 = arith.constant 0.000000e+00 : f32
    %3 = vector.broadcast %cst_3 : f32 to vector<2x1xf32>
    %4 = arith.cmpf ogt, %2, %3 : vector<2x1xf32>
    %cst_4 = arith.constant 0.00999999977 : f32
    %5 = vector.broadcast %cst_4 : f32 to vector<2x1xf32>
    %6 = arith.mulf %5, %2 : vector<2x1xf32>
    %7 = arith.select %4, %2, %6 : vector<2x1xi1>, vector<2x1xf32>
    %c0_5 = arith.constant 0 : index
    %c0_6 = arith.constant 0 : index
    %8 = vector.load %arg3[%c0_5, %c0_6] : memref<1x64xf32, #tpu.memory_space<vmem>>, vector<1x64xf32>
    %cst_7 = arith.constant dense<0.000000e+00> : vector<2x64xf32>
    %9 = tpu.matmul %7, %8, %cst_7 {dimension_numbers = #tpu.dot_dimension_numbers<[1], [0], [0], [1], [0, 0, 1, 1], [], []>} : vector<2x1xf32>, vector<1x64xf32>, vector<2x64xf32> -> vector<2x64xf32>
    %cst_8 = arith.constant 0.000000e+00 : f32
    %10 = vector.broadcast %cst_8 : f32 to vector<2x64xf32>
    %11 = arith.cmpf ogt, %9, %10 : vector<2x64xf32>
    %cst_9 = arith.constant 0.00999999977 : f32
    %12 = vector.broadcast %cst_9 : f32 to vector<2x64xf32>
    %13 = arith.mulf %12, %9 : vector<2x64xf32>
    %14 = arith.select %11, %9, %13 : vector<2x64xi1>, vector<2x64xf32>
    %15 = arith.mulf %0, %14 : vector<2x64xf32>
    %c0_10 = arith.constant 0 : index
    %c0_11 = arith.constant 0 : index
    %16 = vector.load %arg4[%c0_10, %c0_11] : memref<2x64xf32, #tpu.memory_space<vmem>>, vector<2x64xf32>
    tpu.vector_store %arg4[%c0_10, %c0_11], %15 {strides = array<i32>} : memref<2x64xf32, #tpu.memory_space<vmem>>, vector<2x64xf32>,
    return
  }
  func.func @transform_0(%arg0: i32) -> (i32, i32) {
    %c0_i32 = arith.constant 0 : i32
    %c0_i32_0 = arith.constant 0 : i32
    return %arg0, %c0_i32 : i32, i32
  }
  func.func @transform_1(%arg0: i32) -> (i32, i32) {
    %c0_i32 = arith.constant 0 : i32
    %c0_i32_0 = arith.constant 0 : i32
    %c0_i32_1 = arith.constant 0 : i32
    return %c0_i32, %c0_i32_0 : i32, i32
  }
  func.func @transform_2(%arg0: i32) -> (i32, i32) {
    %c0_i32 = arith.constant 0 : i32
    %c0_i32_0 = arith.constant 0 : i32
    %c0_i32_1 = arith.constant 0 : i32
    return %c0_i32, %c0_i32_0 : i32, i32
  }
  func.func @transform_3(%arg0: i32) -> (i32, i32) {
    %c0_i32 = arith.constant 0 : i32
    %c0_i32_0 = arith.constant 0 : i32
    return %arg0, %c0_i32 : i32, i32
  }
}

</mosaic_0001>

<bundles_post_ra>
// kernel: tpu_custom_call.1
= control target key start
LH: loop header
LB: loop body
LE: loop exit
PB: predicated region body
PF: predicated region fallthrough
CT: control target
= control target key end

     0   :  { %s186_s0 = inlined_call_operand.vmem [shape: f32[2,64], index: 0, kind: input, shape index: {}]   ;;  %s187_s1 = inlined_call_operand.vmem [shape: f32[64,1], index: 1, kind: input, shape index: {}]   ;;  %s188_s2 = inlined_call_operand.vmem [shape: f32[1,64], index: 2, kind: input, shape index: {}]   ;;  %s189_s3 = inlined_call_operand.hbm [shape: f32[2,64], index: 3, kind: output, shape index: {}]  }
   0x1   :  { %v23_v0 = vld [vmem:[%s187_s1 + $0x38] sm:$0xff]  ;;  %v22_v1 = vld [vmem:[%s187_s1 + $0x30] sm:$0xff]  ;;  %v21_v2 = vld [vmem:[%s187_s1 + $0x28] sm:$0xff] }
   0x2   :  { %36 = vmatpush.msra.mxu0 %v23_v0 }
   0x4   :  { %37 = vmatpush.msra.mxu0 %v22_v1 }
   0x5   :  { %8 = vsyncpa [#allocation3], 0  ;;  %v20_v3 = vld [vmem:[%s187_s1 + $0x20] sm:$0xff]  ;;  %v19_v4 = vld [vmem:[%s187_s1 + $0x18] sm:$0xff]  ;;  %vm24_vm0 = vcmask 523264   ;;  %vm56_vm1 = vcmask 1040384  }
   0x6   :  { %38 = vmatpush.msra.mxu0 %v21_v2  ;;  %v18_v5 = vld [vmem:[%s187_s1 + $0x10] sm:$0xff]  ;;  %v17_v6 = vld [vmem:[%s187_s1 + $0x8] sm:$0xff]  ;;  %v16_v7 = vld [vmem:[%s187_s1] sm:$0xff]  ;;  %vm52_vm3 = vcmask 7168   ;;  %s132_s1 = smov [#allocation2]   ;;  %s93_s7 = sshll.u32 %s189_s3, 4  ;;  %s94_s7 = int_to_ptr.hbm [resolvable:$true] %s93_s7 }
   0x7   :  { %v15_v8 = vld [vmem:[%s186_s0] sm:$0x3]  ;;  %s91_s0 = sshll.u32 %s132_s1, 4  ;;  %vm84_vm5 = vcmask 517120   ;;  %s92_s0 = int_to_ptr.vmem [resolvable:$true] %s91_s0 }
   0x8   :  { %39 = vmatpush.msra.mxu0 %v20_v3  ;;  %v51_v9 = vld [vmem:[%s188_s2] sm:$0x1] }
   0x9   :  { %103 = vmatpush.msk.msra.mxu1 %vm56_vm1, %v51_v9 }
   0xa   :  { %40 = vmatpush.msra.mxu0 %v19_v4 }
   0xc   :  { %41 = vmatpush.msra.mxu0 %v18_v5 }
   0xe   :  { %42 = vmatpush.msra.mxu0 %v17_v6 }
  0x10   :  { %43 = vmatpush.msra.mxu0 %v16_v7 }
  0x11   :  { %102 = vmatmul.msk.f32.vlgmr.msra.gmra.mxu0 %vm24_vm0, %v15_v8 }
  0x8e   :  { %v45_v10 = vpop.f32.mrf.mxu0 }
  0x8f   :  { %vm48_vm2 = vcmp.gt.f32.partialorder %v45_v10, 0.0  ;;  %v49_v11 = vmul.f32 0.01, %v45_v10 }
  0x91   :  { %v50_v12 = vsel %vm48_vm2, %v45_v10, %v49_v11 }
  0x92   :  { %104 = vmatmul.msk.f32.vlgmr.msra.gmra.mxu1 %vm52_vm3, %v50_v12 }
 0x10f   :  { %v77_v13 = vpop.f32.mrf.mxu1 }
 0x110   :  { %vm80_vm4 = vcmp.gt.f32.partialorder %v77_v13, 0.0  ;;  %v81_v14 = vmul.f32 0.01, %v77_v13 }
 0x112   :  { %v82_v15 = vsel %vm80_vm4, %v77_v13, %v81_v14 }
 0x113   :  { %v83_v16 = vmul.f32 %v82_v15, %v15_v8 }
 0x115   :  { %85 = vst.msk [vmem:[#allocation2] sm:$0x3] %vm84_vm5, %v83_v16 }
 0x116   :  { %96 = dma.vmem_to_hbm [thread:$0]  %s92_s0, 32, %s94_s7, [#allocation3]  }
 0x117   :  { %130 = dma.done.wait [#allocation3], 32  }
 0x118   :  { %131 = vsyncadd [#allocation3], 4294967264 }
 0x119   :  { %101 = vsyncpa [#allocation3], 1 }

</bundles_post_ra>
